<compile_context>
chip_gen: v7x
topology: tpu7x:2x2x1
jax: 0.10.0
libtpu: 0.0.40
codegen_flags: <defaults>
</compile_context>

<pallas_src>
import jax
import jax.numpy as jnp
from jax.experimental import pallas as pl
from jax.experimental.pallas import tpu as pltpu

_MIB = 1 << 20


def _broadcast_table_kernel(emb_ref, out_ref):
    # emb_ref: (pack, tf) packed table chunk (VMEM-resident across the inner
    #          batch sweep because its block index is constant over that axis)
    # out_ref: (tb*pack, tf) lane-dense output tile for the current batch chunk
    reps = out_ref.shape[0] // emb_ref.shape[0]
    out_ref[...] = jnp.tile(emb_ref[...], (reps, 1))


def _tpu_vmem_capacity_bytes():
    try:
        return int(pltpu.get_tpu_info().vmem_capacity_bytes)
    except Exception:
        return 64 * _MIB  # conservative default (v7x per-TensorCore physical)


def _plan_tiles(batch, pack, packed_cols, itemsize):
    """Pick (tb, tf): batch rows per step, packed-feature columns per step.

    Output tile = (tb*pack, tf) elements.  Aims at a generation-aware byte
    target, keeps (8,128)/full-extent tiling legality, and guarantees >= 2
    grid steps when batch >= 2 (so v7x's second TensorCore gets work).
    """
    vmem_cap = _tpu_vmem_capacity_bytes()
    # ~8 MiB tiles on 128 MiB VMEM (v5e/v6e), ~4 MiB on 64 MiB (v7x).
    tile_target = min(max(vmem_cap // 16, 1 * _MIB), 8 * _MIB)

    row_bytes = pack * packed_cols * itemsize  # one batch row, full width
    if row_bytes <= tile_target:
        tf = packed_cols                        # no feature tiling needed
        tb = min(batch, max(1, tile_target // row_bytes))
    else:
        # A single batch row exceeds the tile target: chunk the feature axis
        # in multiples of 128 lanes and emit one batch row per step.
        tf = (tile_target // (pack * itemsize)) // 128 * 128
        tf = max(128, min(tf, packed_cols))
        tb = 1

    # Guarantee >= 2 (parallel) grid steps when batch >= 2: costs at most one
    # extra ~0.35us step on single-core chips, avoids idling a v7x TensorCore.
    if tb >= batch and tf >= packed_cols and batch >= 2:
        tb = pl.cdiv(batch, 2)

    # Legality of the output block's sublane dim: tb*pack must be a multiple
    # of 8 or equal the full extent batch*pack.  Only reachable when pack == 1
    # (flat_dim not divisible by 8).
    if (tb * pack) % 8 != 0 and tb != batch:
        tb = (tb // 8) * 8
        if tb < 8:
            tb = batch          # full-extent block is always legal
    return tb, tf


def learnable_per_node_embedding(node_values, embeddings, *, min_pallas_bytes=1 * _MIB):
    """node_values: [B, ...] (only shape[0] is used); embeddings: [N, D].

    Returns [B, N, D] = embeddings broadcast over the batch axis, matching the
    PyTorch module's forward.
    """
    batch = node_values.shape[0]
    num_nodes, embedding_dim = embeddings.shape
    flat_dim = num_nodes * embedding_dim
    itemsize = jnp.dtype(embeddings.dtype).itemsize

    # Tiny outputs: kernel launch + DMA setup dominate; XLA's broadcast wins.
    if batch * flat_dim * itemsize < min_pallas_bytes:
        return jnp.broadcast_to(embeddings[None, :, :],
                                (batch, num_nodes, embedding_dim))

    # Sublane-packed layout: (8, F/8) table and (B*8, F/8) output when F % 8
    # == 0 (fully packed vregs); otherwise the lane-dense (1, F) / (B, F)
    # layout (rare, still correct — trailing vregs masked).
    pack = 8 if flat_dim % 8 == 0 else 1
    packed_cols = flat_dim // pack
    emb_packed = embeddings.reshape(pack, packed_cols)

    tb, tf = _plan_tiles(batch, pack, packed_cols, itemsize)
    grid = (pl.cdiv(packed_cols, tf), pl.cdiv(batch, tb))  # feature outer, batch inner

    out_tile_bytes = tb * pack * tf * itemsize
    tbl_tile_bytes = pack * tf * itemsize
    working_set = 2 * (out_tile_bytes + tbl_tile_bytes)     # double-buffered
    vmem_limit = int(min(max(working_set * 5 // 4 + 4 * _MIB, 32 * _MIB), 48 * _MIB))

    out_packed = pl.pallas_call(
        _broadcast_table_kernel,
        out_shape=jax.ShapeDtypeStruct((batch * pack, packed_cols), embeddings.dtype),
        grid_spec=pltpu.PrefetchScalarGridSpec(
            num_scalar_prefetch=0,
            grid=grid,
            in_specs=[
                # Feature axis is the OUTER grid axis, so this block index is
                # constant across the inner batch sweep -> the table chunk
                # stays resident in VMEM and is re-DMA'd only once per chunk.
                pl.BlockSpec((pack, tf), lambda f, b: (0, f)),
            ],
            out_specs=pl.BlockSpec((tb * pack, tf), lambda f, b: (b, f)),
        ),
        compiler_params=pltpu.CompilerParams(
            dimension_semantics=("parallel", "parallel"),
            vmem_limit_bytes=vmem_limit,
        ),
        cost_estimate=pl.CostEstimate(
            flops=0,
            transcendentals=0,
            # B*F writes + one full pass of table reads.
            bytes_accessed=(batch + 1) * flat_dim * itemsize,
        ),
    )(emb_packed)

    # Bit-exact relabeling of the contiguous row-major buffer.
    return out_packed.reshape(batch, num_nodes, embedding_dim)


def init_embeddings(key, num_nodes, embedding_dim, dtype=jnp.float32):
    """Xavier-uniform init, matching nn.init.xavier_uniform_ on an
    (num_nodes, embedding_dim) weight: bound = sqrt(6 / (fan_in + fan_out))."""
    bound = (6.0 / (num_nodes + embedding_dim)) ** 0.5
    return jax.random.uniform(
        key, (num_nodes, embedding_dim), dtype=dtype, minval=-bound, maxval=bound
    )


if __name__ == "__main__":
    key = jax.random.PRNGKey(0)
    k_emb, k_vals, k_emb2 = jax.random.split(key, 3)

    # Small shapes consistent with the module.
    batch_size, num_nodes, embedding_dim = 2, 16, 32
    embeddings = init_embeddings(k_emb, num_nodes, embedding_dim)
    # node_values content is irrelevant to the forward pass; only shape[0] is used.
    node_values = jax.random.normal(k_vals, (batch_size, num_nodes), jnp.float32)

    ref = jnp.broadcast_to(
        embeddings[None, :, :], (batch_size, num_nodes, embedding_dim)
    )

    # 1) Pallas path (force past the tiny-shape fallback so the kernel runs).
    out = learnable_per_node_embedding(node_values, embeddings, min_pallas_bytes=0)
    out = jax.block_until_ready(out)
    assert out.shape == (batch_size, num_nodes, embedding_dim)
    assert out.dtype == embeddings.dtype
    assert bool(jnp.array_equal(out, ref)), "Pallas packed-layout mismatch vs reference"

    # 2) Pallas path where flat_dim is not divisible by 8 (pack == 1 layout).
    emb_odd = init_embeddings(k_emb2, 5, 3)
    out_odd = jax.block_until_ready(
        learnable_per_node_embedding(node_values, emb_odd, min_pallas_bytes=0)
    )
    ref_odd = jnp.broadcast_to(emb_odd[None, :, :], (batch_size, 5, 3))
    assert bool(jnp.array_equal(out_odd, ref_odd)), "Pallas pack=1 path mismatch"

    # 3) Default call: tiny shapes take the jnp.broadcast_to fallback.
    out_fb = jax.block_until_ready(
        learnable_per_node_embedding(node_values, embeddings)
    )
    assert bool(jnp.array_equal(out_fb, ref)), "Fallback path mismatch"

    print("KERNEL_OK")
</pallas_src>

<mosaic_0001>
module attributes {stable_mosaic.version = 11 : i64} {
  func.func @_broadcast_table_kernel(%arg0: i32, %arg1: i32, %arg2: memref<8x64xf32, #tpu.memory_space<vmem>>, %arg3: memref<8x64xf32, #tpu.memory_space<vmem>>) attributes {dimension_semantics = [#tpu.dimension_semantics<parallel>, #tpu.dimension_semantics<parallel>], iteration_bounds = array<i64: 1, 2>, scalar_prefetch = 0 : i64, scratch_operands = 0 : i64, tpu.core_type = #tpu.core_type<tc>, window_params = [{transform_indices = @transform_0, window_bounds = array<i64: 8, 64>}, {transform_indices = @transform_1, window_bounds = array<i64: 8, 64>}]} {
    %c0 = arith.constant 0 : index
    %c0_0 = arith.constant 0 : index
    %0 = vector.load %arg2[%c0, %c0_0] : memref<8x64xf32, #tpu.memory_space<vmem>>, vector<8x64xf32>
    %c0_1 = arith.constant 0 : index
    %c0_2 = arith.constant 0 : index
    %1 = vector.load %arg3[%c0_1, %c0_2] : memref<8x64xf32, #tpu.memory_space<vmem>>, vector<8x64xf32>
    tpu.vector_store %arg3[%c0_1, %c0_2], %0 {strides = array<i32>} : memref<8x64xf32, #tpu.memory_space<vmem>>, vector<8x64xf32>,
    return
  }
  func.func @transform_0(%arg0: i32, %arg1: i32) -> (i32, i32) {
    %c0_i32 = arith.constant 0 : i32
    %c0_i32_0 = arith.constant 0 : i32
    return %c0_i32, %arg0 : i32, i32
  }
  func.func @transform_1(%arg0: i32, %arg1: i32) -> (i32, i32) {
    %c0_i32 = arith.constant 0 : i32
    return %arg1, %arg0 : i32, i32
  }
}

</mosaic_0001>

<bundles_post_ra>
// kernel: tpu_custom_call.1
= control target key start
LH: loop header
LB: loop body
LE: loop exit
PB: predicated region body
PF: predicated region fallthrough
CT: control target
= control target key end

     0   :  { %6 = vsyncpa [#allocation3], 0  ;;  %s563_s0 = inlined_call_operand.hbm [shape: f32[8,64], index: 0, kind: input, shape index: {}]   ;;  %s564_s1 = inlined_call_operand.hbm [shape: f32[16,64], index: 1, kind: output, shape index: {}]  }
   0x1   :  { %7 = vsyncpa [#allocation4], 0 }
   0x2   :  { %9 = vsyncpa [#allocation4 + $0x1], 0  ;;  %s418_s6 = smov 0   ;;  %s420_s7 = smov 0  }
   0x3   :  { %s422_s8 = smov 0   ;;  %s424_s9 = smov 0  }
   0x4   :  { %s426_s10 = smov 0   ;;  %s428_s11 = smov 0  }
   0x5 LB: > { %s217_s12 = sadd.s32 4294967295, %s404_s11   ;;  %s218_s13 = sadd.s32 4294967294, %s404_s11   ;;  %s404_s11 = sphi %s428_s11, %s15_s11   ;;  %s400_s10 = sphi %s426_s10, %s582_s10   ;;  %s396_s9 = sphi %s424_s9, %s581_s9   ;;  %s392_s8 = sphi %s422_s8, %s580_s8   ;;  %s388_s7 = sphi %s420_s7, %s579_s7   ;;  %s384_s6 = sphi %s418_s6, %s578_s6  }
   0x6   : > { %s24_s14 = sadd.s32 1, %s400_s10  ;;  %s62_s15 = sadd.s32 1, %s392_s8 }
   0x7   : > { %p25_p0 = scmp.ge.s32.totalorder %s24_s14, 2  ;;  %p72_p1 = scmp.ne.s32.totalorder %s392_s8, %s388_s7 }
   0x8   : > { %p73_p2 = scmp.eq.s32.totalorder %s217_s12, 1  ;;  %p78_p3 = scmp.ne.s32.totalorder %s388_s7, %s384_s6 }
   0x9   : > { %s584_s14 = smov (%p25_p0, %s24_s14), 0  ;;  %p79_p5 = scmp.eq.s32.totalorder %s218_s13, 1 }
   0xa   : > { %p458_p4 = por %p73_p2, %p72_p1  ;;  %s57_s17 = ssub.s32 %s400_s10, %s584_s14 }
   0xb   : > { %p219_p6 = scmp.ge.s32.totalorder %s404_s11, 1  ;;  %p60_p7 = scmp.eq.s32.totalorder %s57_s17, 0 }
   0xc   : > { %s569_s16 = scalar_select %p458_p4, 1, 0 }
   0xd   : > { %p465_p8 = por %p79_p5, %p78_p3  ;;  %p86_p9 = scmp.lt.s32.totalorder %s404_s11, 3 }
   0xe   : > { %s471_s19 = scalar_select %p60_p7, %s392_s8, %s62_s15  }
   0xf   : > { %s570_s18 = scalar_select %p465_p8, 1, 0 }
  0x10   : > { %p473_p10 = pnand %p219_p6, %p86_p9  ;;  %p477_p11 = scmp.eq.s32.totalorder %s217_s12, 0 }
  0x11   : > { %s406_s22 = smov [#allocation2]   ;;  %s294_s27 = scalar_lea.hbm %s563_s0, 128 }
  0x12   : > { %s571_s20 = scalar_select %p473_p10, 1, 0 }
  0x13   : > { %s572_s21 = scalar_select %p477_p11, 1, 0 }
  0x14   : > { %p234_p12 = pneg %p473_p10  ;;  %s101_s23 = sshll.u32 %s406_s22, 4  ;;  %s102_s23 = int_to_ptr.vmem [resolvable:$true] %s101_s23 }
  0x15   : > { %p295_p0 = scmp.ne.s32.totalorder %s563_s0, %s294_s27  ;;  %p301_p5 = scmp.lt.u32.totalorder %s294_s27, %s563_s0 }
  0x16   : > { %p485_p13 = pnand %p477_p11, %p234_p12 }
  0x18   : > { %p296_p1 = pneg %p485_p13 }
  0x1a   : > { %p297_p2 = pnand %p296_p1, %p295_p0 }
  0x1c   : > { %p298_p3 = pneg %p297_p2 }
  0x1e   : > { %p303_p6 = pnand %p301_p5, %p298_p3 }
  0x20   : > { %306 = shalt.err (!%p303_p6)
}
  0x21   : > { %s307_s3 = scalar_lea.vmem %s102_s23, 128  ;;  %p315_p8 = scmp.lt.s32.totalorder %s102_s23, %s102_s23 }
  0x22   : > { %p308_p7 = scmp.ne.s32.totalorder %s102_s23, %s307_s3  ;;  %p316_p4 = scmp.lt.s32.totalorder %s307_s3, %s307_s3 }
  0x24   : > { %p310_p9 = pnand %p308_p7, %p296_p1  ;;  %p317_p11 = por %p316_p4, %p315_p8 }
  0x26   : > { %p311_p12 = pneg %p310_p9 }
  0x28   : > { %p318_p10 = pnand %p317_p11, %p311_p12 }
  0x2a   : > { %321 = shalt.err (!%p318_p10)
}
  0x2b   : > { %237 = dma.hbm_to_vmem [thread:$0]  (!%p485_p13), %s563_s0, 128, %s102_s23, [#allocation3]  }
  0x2c   : > { %p574_p0 = scmp.ne.s32.totalorder %s571_s20, 0 }
  0x2d   : > { %p575_p2 = scmp.ne.s32.totalorder (!%p574_p0), %s572_s21, 0 }
  0x2e   : > { %114 = sbr.rel (%p574_p0) target bundleno = 80 (0x50), region = 24 }
  0x35   : > { %375 = dma.done.wait (%p575_p2), [#allocation3], 128  }
  0x36   : > { %377 = vsyncadd (%p575_p2), [#allocation3], 4294967168  ;;  %s126_s12 = sand.u32 1, %s388_s7   ;;  %s225_s22 = sshll.u32 %s396_s9, 7  ;;  %vm130_vm0 = vcmask 523264   ;;  %v129_v0 = vld [vmem:[#allocation2] sm:$0xff] }
  0x37   : > { %s223_s13 = sshll.u32 %s126_s12, 3  ;;  %s518_s24 = scalar_lea.hbm %s564_s1, %s225_s22 }
  0x38   : > { %s128_s15 = scalar_lea.vmem [#allocation5], %s223_s13  ;;  %s133_s21 = scalar_lea.sflag [#allocation4], %s126_s12 }
  0x39   : > { %s147_s17 = sshll.u32 %s128_s15, 4  ;;  %131 = vst.msk [vmem:[%s128_s15] sm:$0xff] %vm130_vm0, %v129_v0  ;;  %p576_p8 = scmp.ne.s32.totalorder %s569_s16, 0  ;;  %s513_s17 = int_to_ptr.vmem [resolvable:$true] %s147_s17 }
  0x3a   : > { %s322_s25 = scalar_lea.vmem %s513_s17, 128  ;;  %s407_s9 = smov [#allocation5]  }
  0x3b   : > { %p323_p4 = scmp.ne.s32.totalorder %s513_s17, %s322_s25  ;;  %s326_s26 = sshll.u32 %s407_s9, 4  ;;  %s327_s26 = int_to_ptr.vmem [resolvable:$false] %s326_s26 }
  0x3c   : > { %s328_s27 = scalar_lea.vmem %s327_s26, 256  ;;  %p329_p13 = scmp.lt.s32.totalorder %s513_s17, %s327_s26 }
  0x3d   : > { %p324_p10 = pnand %p323_p4, %p576_p8  ;;  %p330_p1 = scmp.lt.s32.totalorder %s328_s27, %s322_s25 }
  0x3f   : > { %p325_p11 = pneg %p324_p10  ;;  %p331_p3 = por %p330_p1, %p329_p13 }
  0x41   : > { %p332_p5 = pnand %p331_p3, %p325_p11 }
  0x43   : > { %335 = shalt.err (!%p332_p5)
}
  0x44   : > { %s336_s28 = scalar_lea.hbm %s518_s24, 128  ;;  %s340_s2 = scalar_lea.hbm %s564_s1, 256 }
  0x45   : > { %p337_p6 = scmp.ne.s32.totalorder %s518_s24, %s336_s28  ;;  %p341_p12 = scmp.lt.u32.totalorder %s518_s24, %s564_s1 }
  0x46   : > { %p342_p0 = scmp.lt.u32.totalorder %s340_s2, %s336_s28  ;;  %p344_p4 = scmp.lt.u32.totalorder %s336_s28, %s518_s24 }
  0x47   : > { %p338_p7 = pnand %p337_p6, %p576_p8 }
  0x48   : > { %p343_p2 = por %p342_p0, %p341_p12 }
  0x49   : > { %p339_p9 = pneg %p338_p7 }
  0x4a   : > { %p345_p10 = por %p344_p4, %p343_p2 }
  0x4c   : > { %p346_p11 = pnand %p345_p10, %p339_p9 }
  0x4e   : > { %349 = shalt.err (!%p346_p11)
}
  0x4f   : > { %232 = dma.vmem_to_hbm [thread:$0]  (%p576_p8), %s513_s17, 128, %s518_s24, %s133_s21  }
  0x50 PF: > { %p244_p13 = scmp.ge.s32.totalorder %s404_s11, 2  ;;  %s159_s5 = sand.u32 1, %s384_s6  }
  0x51   : > { %p577_p1 = scmp.ne.s32.totalorder %s570_s18, 0  ;;  %s160_s12 = scalar_lea.sflag [#allocation4], %s159_s5 }
  0x53   : > { %p239_p3 = pnand %p244_p13, %p577_p1 }
  0x55   : > { %379 = dma.done.wait (!%p239_p3), %s160_s12, 128  }
  0x56   : > { %381 = vsyncadd (!%p239_p3), %s160_s12, 4294967168  ;;  %s15_s11 = sadd.s32 1, %s404_s11   ;;  %s578_s6 = smov %s388_s7 }
  0x57   : > { %p12_p5 = scmp.ge.s32.totalorder %s15_s11, 4   ;;  %s579_s7 = smov %s392_s8 }
  0x58   : > { %s580_s8 = smov %s471_s19  ;;  %s581_s9 = smov %s400_s10 }
  0x59   : > { %s582_s10 = smov %s584_s14  ;;  %14 = sbr.rel (!%p12_p5) target bundleno = 5 (0x5), region = 62 }
  0x60   :  { %165 = vsyncpa [#allocation3], 1 }
  0x61   :  { %167 = vsyncpa [#allocation3 + $0x1], 1 }
  0x62   :  { %168 = vsyncpa [#allocation4], 1 }
  0x63   :  { %170 = vsyncpa [#allocation4 + $0x1], 1 }

</bundles_post_ra>
